<compile_context>
chip_gen: v6e
topology: v6e:2x2x1
jax: 0.10.0
libtpu: 0.0.40
codegen_flags: <defaults>
</compile_context>

<pallas_src>
import jax
import jax.numpy as jnp
from jax.experimental import pallas as pl
from jax.experimental.pallas import tpu as pltpu


def _round_up(x, m):
    return ((x + m - 1) // m) * m


def _cdiv(a, b):
    return -(-a // b)


# ----------------------------------------------------------------------------
# Pallas kernel 1: tiled GEMM, bf16 inputs, f32 accumulation, optional sigmoid
# ----------------------------------------------------------------------------
def _matmul_act(a, b, act="none", tm_cap=512, tk_cap=128):
    """C = act(A @ B). a: (M, K), b: (K, N). Tiled over M (parallel) and K
    (reduction, f32 VMEM accumulator). Operands are cast to bf16."""
    M, K = a.shape
    K2, N = b.shape
    assert K == K2

    # Balanced M tiles (padded with zero rows) -> >=2 parallel steps when large.
    n_m = max(1, _cdiv(M, tm_cap))
    tm = _round_up(_cdiv(M, n_m), 16)
    Mp = tm * n_m

    # K tiling keeps per-block VMEM bounded on v7x and is the reduction axis.
    if K <= tk_cap:
        tk, Kp = K, K
    else:
        tk = tk_cap
        Kp = _round_up(K, tk)
    n_k = Kp // tk

    a = a.astype(jnp.bfloat16)
    b = b.astype(jnp.bfloat16)
    if Mp != M or Kp != K:
        a = jnp.pad(a, ((0, Mp - M), (0, Kp - K)))
    if Kp != K:
        b = jnp.pad(b, ((0, Kp - K), (0, 0)))

    def kernel(a_ref, b_ref, o_ref, acc_ref):
        @pl.when(pl.program_id(1) == 0)
        def _():
            acc_ref[...] = jnp.zeros_like(acc_ref)

        acc_ref[...] += jnp.dot(a_ref[...], b_ref[...],
                                preferred_element_type=jnp.float32)

        @pl.when(pl.program_id(1) == pl.num_programs(1) - 1)
        def _():
            acc = acc_ref[...]
            if act == "sigmoid":
                acc = jax.nn.sigmoid(acc)
            o_ref[...] = acc

    out = pl.pallas_call(
        kernel,
        out_shape=jax.ShapeDtypeStruct((Mp, N), jnp.float32),
        grid=(n_m, n_k),
        in_specs=[
            pl.BlockSpec((tm, tk), lambda i, k: (i, k)),
            pl.BlockSpec((tk, N), lambda i, k: (k, 0)),
        ],
        out_specs=pl.BlockSpec((tm, N), lambda i, k: (i, 0)),
        scratch_shapes=[pltpu.VMEM((tm, N), jnp.float32)],
        compiler_params=pltpu.CompilerParams(
            dimension_semantics=("parallel", "arbitrary")),
    )(a, b)
    return out[:M] if Mp != M else out


# ----------------------------------------------------------------------------
# Pallas kernels 2+3: training-mode BatchNorm2d + ReLU (two tiled passes)
# ----------------------------------------------------------------------------
def _bn_relu(x, gamma, beta, eps=1e-5, tm_cap=1024):
    """x: (M, C) f32, stats over M (batch+spatial), biased var as in torch BN."""
    M, C = x.shape
    n_m = max(1, _cdiv(M, tm_cap))
    tm = _round_up(_cdiv(M, n_m), 8)
    Mp = tm * n_m
    xp = jnp.pad(x, ((0, Mp - M), (0, 0))) if Mp != M else x
    g = gamma.reshape(1, C).astype(jnp.float32)
    b = beta.reshape(1, C).astype(jnp.float32)
    inv_m = 1.0 / float(M)  # padded rows are zero -> contribute 0 to both sums

    # Pass 1: per-channel sum / sum-of-squares -> (scale, shift).
    def stats_kernel(x_ref, g_ref, b_ref, sc_ref, sh_ref, sum_ref, sq_ref):
        @pl.when(pl.program_id(0) == 0)
        def _():
            sum_ref[...] = jnp.zeros_like(sum_ref)
            sq_ref[...] = jnp.zeros_like(sq_ref)

        xv = x_ref[...]
        sum_ref[...] += jnp.sum(xv, axis=0, keepdims=True)
        sq_ref[...] += jnp.sum(xv * xv, axis=0, keepdims=True)

        @pl.when(pl.program_id(0) == pl.num_programs(0) - 1)
        def _():
            mean = sum_ref[...] * inv_m
            var = sq_ref[...] * inv_m - mean * mean   # biased, as torch BN (train)
            inv_std = jax.lax.rsqrt(var + eps)
            scale = g_ref[...] * inv_std
            sc_ref[...] = scale
            sh_ref[...] = b_ref[...] - mean * scale

    scale, shift = pl.pallas_call(
        stats_kernel,
        out_shape=(jax.ShapeDtypeStruct((1, C), jnp.float32),
                   jax.ShapeDtypeStruct((1, C), jnp.float32)),
        grid=(n_m,),
        in_specs=[
            pl.BlockSpec((tm, C), lambda i: (i, 0)),
            pl.BlockSpec((1, C), lambda i: (0, 0)),
            pl.BlockSpec((1, C), lambda i: (0, 0)),
        ],
        out_specs=(pl.BlockSpec((1, C), lambda i: (0, 0)),
                   pl.BlockSpec((1, C), lambda i: (0, 0))),
        scratch_shapes=[pltpu.VMEM((1, C), jnp.float32),
                        pltpu.VMEM((1, C), jnp.float32)],
        compiler_params=pltpu.CompilerParams(
            dimension_semantics=("arbitrary",)),
    )(xp, g, b)

    # Pass 2: y = relu(x * scale + shift), tiled over M (pipelined).
    def apply_kernel(x_ref, sc_ref, sh_ref, o_ref):
        o_ref[...] = jnp.maximum(x_ref[...] * sc_ref[...] + sh_ref[...], 0.0)

    y = pl.pallas_call(
        apply_kernel,
        out_shape=jax.ShapeDtypeStruct((Mp, C), jnp.float32),
        grid=(n_m,),
        in_specs=[
            pl.BlockSpec((tm, C), lambda i: (i, 0)),
            pl.BlockSpec((1, C), lambda i: (0, 0)),
            pl.BlockSpec((1, C), lambda i: (0, 0)),
        ],
        out_specs=pl.BlockSpec((tm, C), lambda i: (i, 0)),
        compiler_params=pltpu.CompilerParams(
            dimension_semantics=("parallel",)),
    )(xp, scale, shift)
    return y[:M] if Mp != M else y


# ----------------------------------------------------------------------------
# ConvTranspose2d lowerings
# ----------------------------------------------------------------------------
def _w_mat_s1(w):
    """(Cin, Cout, 4, 4) -> (Cin, 16*Cout) for the 1x1-input, stride-1 layer."""
    cin, cout, k, _ = w.shape
    return jnp.transpose(w, (0, 2, 3, 1)).reshape(cin, k * k * cout)


def _w_mat_s2(w):
    """(Cin, Cout, 4, 4) -> (4*Cin, 4*Cout) polyphase matrix for k=4,s=2,p=1.

    Row index (r, c, ci); column index (ph, pw, co); entry = w[ci, co, 3-2r-ph, 3-2c-pw].
    """
    cin, cout, k, _ = w.shape
    assert k == 4
    wr = w[:, :, ::-1, ::-1].reshape(cin, cout, 2, 2, 2, 2)   # [ci,co,r,ph,c,pw]
    wm = jnp.transpose(wr, (2, 4, 0, 3, 5, 1))                # [r,c,ci,ph,pw,co]
    return wm.reshape(4 * cin, 4 * cout)


def conv1_1x1_to_4x4(z, w1_mat, cout):
    """ConvTranspose2d(zin, cout, 4, stride=1, pad=0) on a 1x1 spatial input."""
    B = z.shape[0]
    out = _matmul_act(z, w1_mat)               # (B, 16*cout)
    return out.reshape(B, 4, 4, cout)


def conv_transpose_s2(x, w_mat, cout, act="none"):
    """ConvTranspose2d(k=4, s=2, p=1) via polyphase (sub-pixel) GEMM.

    x: (B, H, W, Cin) NHWC; w_mat: (4*Cin, 4*Cout) from _w_mat_s2.
    Returns (B, 2H, 2W, Cout).
    """
    B, H, W, Cin = x.shape
    xpad = jnp.pad(x, ((0, 0), (1, 1), (1, 1), (0, 0)))
    # 2x2 sliding windows of the padded input: (H+1) x (W+1) positions.
    pats = [xpad[:, r:r + H + 1, c:c + W + 1, :] for r in range(2) for c in range(2)]
    patches = jnp.stack(pats, axis=3)                         # (B, H+1, W+1, 4, Cin)
    a = patches.reshape(B * (H + 1) * (W + 1), 4 * Cin)
    out = _matmul_act(a, w_mat, act=act)                      # (M, 4*Cout)
    o = out.reshape(B, H + 1, W + 1, 2, 2, cout)
    # depth-to-space: y[b, 2i+ph, 2j+pw, co] = o[b, i+ph, j+pw, ph, pw, co]
    rows = []
    for ph in range(2):
        cols = [o[:, ph:ph + H, pw:pw + W, ph, pw, :] for pw in range(2)]
        rows.append(jnp.stack(cols, axis=3))                  # (B, H, W, 2, Cout)
    y = jnp.stack(rows, axis=2)                               # (B, H, 2, W, 2, Cout)
    return y.reshape(B, 2 * H, 2 * W, cout)


# ----------------------------------------------------------------------------
# Generator2D forward
# ----------------------------------------------------------------------------
def generator2d_forward(z, wp):
    """z: (N, z_size) f32 -> (N, n_channel, 64, 64), sigmoid output."""
    # TODO(synk): the PyTorch source views the input to 5D (N, z, 1, 1, 1), which
    # nn.ConvTranspose2d itself would reject; we implement the intended (N, z, 1, 1).
    nf8 = wp["g1"].shape[0]
    x = conv1_1x1_to_4x4(z, wp["w1m"], nf8)                          # (N,4,4,8nf)
    x = _bn_relu(x.reshape(-1, nf8), wp["g1"], wp["b1"]).reshape(x.shape)

    for i, wkey in ((2, "w2m"), (3, "w3m"), (4, "w4m")):
        cout = wp[f"g{i}"].shape[0]
        x = conv_transpose_s2(x, wp[wkey], cout)
        B, H, W, C = x.shape
        x = _bn_relu(x.reshape(-1, C), wp[f"g{i}"], wp[f"b{i}"]).reshape(B, H, W, C)

    n_channel = wp["w5m"].shape[1] // 4
    y = conv_transpose_s2(x, wp["w5m"], n_channel, act="sigmoid")    # (N,64,64,C)
    # TODO(synk): final NHWC->NCHW kept as a (tiny) XLA transpose rather than
    # folding into the last kernel's store pattern.
    return jnp.transpose(y, (0, 3, 1, 2))


def init_params(key, z_size, nf, n_channel):
    """Synthetic weights in PyTorch ConvTranspose2d layout (Cin, Cout, k, k)."""
    ks = jax.random.split(key, 5)
    scale = 0.02
    p = {
        "w1": scale * jax.random.normal(ks[0], (z_size, nf * 8, 4, 4), jnp.float32),
        "w2": scale * jax.random.normal(ks[1], (nf * 8, nf * 4, 4, 4), jnp.float32),
        "w3": scale * jax.random.normal(ks[2], (nf * 4, nf * 2, 4, 4), jnp.float32),
        "w4": scale * jax.random.normal(ks[3], (nf * 2, nf * 1, 4, 4), jnp.float32),
        "w5": scale * jax.random.normal(ks[4], (nf * 1, n_channel, 4, 4), jnp.float32),
    }
    for i, c in zip(range(1, 5), (nf * 8, nf * 4, nf * 2, nf)):
        p[f"g{i}"] = jnp.ones((c,), jnp.float32)
        p[f"b{i}"] = jnp.zeros((c,), jnp.float32)
    return p


def prepare_weights(params):
    """Hoisted (one-time) weight preprocessing: lane-friendly (K, N) bf16 GEMM mats."""
    wp = {
        "w1m": _w_mat_s1(params["w1"]).astype(jnp.bfloat16),
        "w2m": _w_mat_s2(params["w2"]).astype(jnp.bfloat16),
        "w3m": _w_mat_s2(params["w3"]).astype(jnp.bfloat16),
        "w4m": _w_mat_s2(params["w4"]).astype(jnp.bfloat16),
        "w5m": _w_mat_s2(params["w5"]).astype(jnp.bfloat16),
    }
    for i in range(1, 5):
        wp[f"g{i}"] = params[f"g{i}"]
        wp[f"b{i}"] = params[f"b{i}"]
    return wp


def _conv_transpose_ref(x_nhwc, w, stride, pad):
    """Pure-JAX reference ConvTranspose2d (PyTorch semantics), f32."""
    cin, cout, k, _ = w.shape
    w_hwio = jnp.transpose(w[:, :, ::-1, ::-1], (2, 3, 0, 1))   # (kh, kw, Cin, Cout)
    return jax.lax.conv_general_dilated(
        x_nhwc, w_hwio, window_strides=(1, 1),
        padding=[(k - 1 - pad, k - 1 - pad)] * 2,
        lhs_dilation=(stride, stride),
        dimension_numbers=("NHWC", "HWIO", "NHWC"))


if __name__ == "__main__":
    # Sanity check of the polyphase conv-transpose building block vs a JAX ref
    # (loose tolerance: the Pallas GEMM runs in bf16 with f32 accumulation).
    kx, kw_ = jax.random.split(jax.random.PRNGKey(1))
    xt = jax.random.normal(kx, (2, 8, 8, 16), jnp.float32)
    wt = 0.1 * jax.random.normal(kw_, (16, 24, 4, 4), jnp.float32)
    yt = jax.block_until_ready(conv_transpose_s2(xt, _w_mat_s2(wt).astype(jnp.bfloat16), 24))
    yr = _conv_transpose_ref(xt, wt, 2, 1)
    err = float(jnp.max(jnp.abs(yt - yr)))
    assert err <= 0.05 * float(jnp.max(jnp.abs(yr))) + 1e-4, err

    # Small, shape-consistent config: z_size=32, n_features_min=8, n_channel=3, batch=2.
    batch, z_size, nf, n_channel = 2, 32, 8, 3
    key = jax.random.PRNGKey(0)
    k_z, k_p = jax.random.split(key)
    z = jax.random.normal(k_z, (batch, z_size), jnp.float32)
    params = init_params(k_p, z_size, nf, n_channel)
    wp = prepare_weights(params)   # one-time weight prep, outside the jitted forward

    fwd = jax.jit(generator2d_forward)
    y = jax.block_until_ready(fwd(z, wp))

    assert y.shape == (batch, n_channel, 64, 64), y.shape
    assert bool(jnp.all(jnp.isfinite(y)))
    assert bool(jnp.all((y >= 0.0) & (y <= 1.0)))  # sigmoid output range
    print("KERNEL_OK")
</pallas_src>

<mosaic_0001>
module attributes {stable_mosaic.version = 11 : i64} {
  func.func @kernel(%arg0: i32, %arg1: i32, %arg2: memref<176x64xbf16, #tpu.memory_space<vmem>>, %arg3: memref<64x96xbf16, #tpu.memory_space<vmem>>, %arg4: memref<176x96xf32, #tpu.memory_space<vmem>>, %arg5: memref<176x96xf32, #tpu.memory_space<vmem>>) attributes {dimension_semantics = [#tpu.dimension_semantics<parallel>, #tpu.dimension_semantics<arbitrary>], iteration_bounds = array<i64: 1, 1>, scalar_prefetch = 0 : i64, scratch_operands = 1 : i64, tpu.core_type = #tpu.core_type<tc>, window_params = [{transform_indices = @transform_0, window_bounds = array<i64: 176, 64>}, {transform_indices = @transform_1, window_bounds = array<i64: 64, 96>}, {transform_indices = @transform_2, window_bounds = array<i64: 176, 96>}]} {
    %c0_i32 = arith.constant 0 : i32
    %0 = arith.cmpi eq, %arg1, %c0_i32 : i32
    %1 = arith.extui %0 : i1 to i32
    %c0_i32_0 = arith.constant 0 : i32
    %2 = arith.cmpi ne, %1, %c0_i32_0 : i32
    scf.if %2 {
      %cst_10 = arith.constant 0.000000e+00 : f32
      %12 = vector.broadcast %cst_10 : f32 to vector<176x96xf32>
      %c0_11 = arith.constant 0 : index
      %c0_12 = arith.constant 0 : index
      %13 = vector.load %arg5[%c0_11, %c0_12] : memref<176x96xf32, #tpu.memory_space<vmem>>, vector<176x96xf32>
      tpu.vector_store %arg5[%c0_11, %c0_12], %12 {strides = array<i32>} : memref<176x96xf32, #tpu.memory_space<vmem>>, vector<176x96xf32>,
    } else {
    }
    %c0 = arith.constant 0 : index
    %c0_1 = arith.constant 0 : index
    %3 = vector.load %arg5[%c0, %c0_1] : memref<176x96xf32, #tpu.memory_space<vmem>>, vector<176x96xf32>
    %c0_2 = arith.constant 0 : index
    %c0_3 = arith.constant 0 : index
    %4 = vector.load %arg2[%c0_2, %c0_3] : memref<176x64xbf16, #tpu.memory_space<vmem>>, vector<176x64xbf16>
    %c0_4 = arith.constant 0 : index
    %c0_5 = arith.constant 0 : index
    %5 = vector.load %arg3[%c0_4, %c0_5] : memref<64x96xbf16, #tpu.memory_space<vmem>>, vector<64x96xbf16>
    %cst = arith.constant dense<0.000000e+00> : vector<176x96xf32>
    %6 = tpu.matmul %4, %5, %cst {dimension_numbers = #tpu.dot_dimension_numbers<[1], [0], [0], [1], [0, 0, 1, 1], [], []>} : vector<176x64xbf16>, vector<64x96xbf16>, vector<176x96xf32> -> vector<176x96xf32>
    %7 = arith.addf %3, %6 : vector<176x96xf32>
    %c0_6 = arith.constant 0 : index
    %c0_7 = arith.constant 0 : index
    %8 = vector.load %arg5[%c0_6, %c0_7] : memref<176x96xf32, #tpu.memory_space<vmem>>, vector<176x96xf32>
    tpu.vector_store %arg5[%c0_6, %c0_7], %7 {strides = array<i32>} : memref<176x96xf32, #tpu.memory_space<vmem>>, vector<176x96xf32>,
    %c0_i32_8 = arith.constant 0 : i32
    %9 = arith.cmpi eq, %arg1, %c0_i32_8 : i32
    %10 = arith.extui %9 : i1 to i32
    %c0_i32_9 = arith.constant 0 : i32
    %11 = arith.cmpi ne, %10, %c0_i32_9 : i32
    scf.if %11 {
      %c0_10 = arith.constant 0 : index
      %c0_11 = arith.constant 0 : index
      %12 = vector.load %arg5[%c0_10, %c0_11] : memref<176x96xf32, #tpu.memory_space<vmem>>, vector<176x96xf32>
      %c0_12 = arith.constant 0 : index
      %c0_13 = arith.constant 0 : index
      %13 = vector.load %arg4[%c0_12, %c0_13] : memref<176x96xf32, #tpu.memory_space<vmem>>, vector<176x96xf32>
      tpu.vector_store %arg4[%c0_12, %c0_13], %12 {strides = array<i32>} : memref<176x96xf32, #tpu.memory_space<vmem>>, vector<176x96xf32>,
    } else {
    }
    return
  }
  func.func @transform_0(%arg0: i32, %arg1: i32) -> (i32, i32) {
    %c0_i32 = arith.constant 0 : i32
    return %arg0, %arg1 : i32, i32
  }
  func.func @transform_1(%arg0: i32, %arg1: i32) -> (i32, i32) {
    %c0_i32 = arith.constant 0 : i32
    %c0_i32_0 = arith.constant 0 : i32
    return %arg1, %c0_i32 : i32, i32
  }
  func.func @transform_2(%arg0: i32, %arg1: i32) -> (i32, i32) {
    %c0_i32 = arith.constant 0 : i32
    %c0_i32_0 = arith.constant 0 : i32
    return %arg0, %c0_i32 : i32, i32
  }
}

</mosaic_0001>

<bundles_post_ra>
// kernel: tpu_custom_call.1
= control target key start
LH: loop header
LB: loop body
LE: loop exit
PB: predicated region body
PF: predicated region fallthrough
CT: control target
= control target key end

     0   :  { %v577_v1 = vmov 0.0   ;;  %vm17_vm0 = vcmask 785408   ;;  %vm578_vm1 = vmmov 0   ;;  %vm171_vm2 = vcmask 523264   ;;  %s774_s0 = inlined_call_operand.vmem [shape: bf16[176,64], index: 0, kind: input, shape index: {}]   ;;  %s775_s1 = inlined_call_operand.vmem [shape: bf16[64,96], index: 1, kind: input, shape index: {}]   ;;  %s776_s2 = inlined_call_operand.hbm [shape: f32[176,96], index: 2, kind: output, shape index: {}]  }
   0x1   :  { %v540_v0 = vld [vmem:[%s775_s1 + $0x18] sm:$0xff]   ;;  %475 = vmatprep.subr.bf16.mxu0 %v577_v1  ;;  %527 = vmatprep.subr.bf16.mxu1 %v577_v1  ;;  %v541_v2 = vld [vmem:[%s775_s1 + $0x10] sm:$0xff]   ;;  %18 = vst.msk [vmem:[#allocation2] sm:$0xff] %vm17_vm0, %v577_v1  ;;  %19 = vst.msk [vmem:[#allocation2 + $0x8] sm:$0xff] %vm17_vm0, %v577_v1 }
   0x2   :  { %476 = vmatpush3.bf16.msra.mxu0 %v540_v0  ;;  %531 = vmatpush3.bf16.msra.mxu1 %v540_v0  ;;  %20 = vst.msk [vmem:[#allocation2 + $0x10] sm:$0xff] %vm17_vm0, %v577_v1  ;;  %21 = vst.msk [vmem:[#allocation2 + $0x18] sm:$0xff] %vm17_vm0, %v577_v1  ;;  %v542_v3 = vld [vmem:[%s775_s1 + $0x8] sm:$0xff]   ;;  %v543_v4 = vld [vmem:[%s775_s1] sm:$0xff]  }
   0x3   :  { %477 = vmatprep.subr.bf16.mxu0 %v577_v1  ;;  %528 = vmatprep.subr.bf16.mxu1 %v577_v1  ;;  %22 = vst.msk [vmem:[#allocation2 + $0x20] sm:$0xff] %vm17_vm0, %v577_v1  ;;  %23 = vst.msk [vmem:[#allocation2 + $0x28] sm:$0xff] %vm17_vm0, %v577_v1  ;;  %v544_v5 = vld [vmem:[%s774_s0] sm:$0xff]   ;;  %v545_v6 = vld [vmem:[%s774_s0 + $0x30] sm:$0xff]  }
   0x4   :  { %483 = vmatprep.mubr.msk.bf16.mxu0 %vm578_vm1, %v577_v1  ;;  %507 = vmatprep.mubr.msk.bf16.mxu1 %vm578_vm1, %v577_v1  ;;  %24 = vst.msk [vmem:[#allocation2 + $0x30] sm:$0xff] %vm17_vm0, %v577_v1  ;;  %25 = vst.msk [vmem:[#allocation2 + $0x38] sm:$0xff] %vm17_vm0, %v577_v1 }
   0x5   :  { %26 = vst.msk [vmem:[#allocation2 + $0x40] sm:$0xff] %vm17_vm0, %v577_v1  ;;  %27 = vst.msk [vmem:[#allocation2 + $0x48] sm:$0xff] %vm17_vm0, %v577_v1 }
   0x6   :  { %28 = vst.msk [vmem:[#allocation2 + $0x50] sm:$0xff] %vm17_vm0, %v577_v1  ;;  %29 = vst.msk [vmem:[#allocation2 + $0x58] sm:$0xff] %vm17_vm0, %v577_v1  ;;  %478 = vmatpush3.bf16.msra.mxu0 %v541_v2  ;;  %532 = vmatpush3.bf16.msra.mxu1 %v541_v2 }
   0x7   :  { %30 = vst.msk [vmem:[#allocation2 + $0x60] sm:$0xff] %vm17_vm0, %v577_v1  ;;  %31 = vst.msk [vmem:[#allocation2 + $0x68] sm:$0xff] %vm17_vm0, %v577_v1  ;;  %479 = vmatprep.subr.bf16.mxu0 %v577_v1  ;;  %529 = vmatprep.subr.bf16.mxu1 %v577_v1 }
   0x8   :  { %32 = vst.msk [vmem:[#allocation2 + $0x70] sm:$0xff] %vm17_vm0, %v577_v1  ;;  %33 = vst.msk [vmem:[#allocation2 + $0x78] sm:$0xff] %vm17_vm0, %v577_v1 }
   0x9   :  { %34 = vst.msk [vmem:[#allocation2 + $0x80] sm:$0xff] %vm17_vm0, %v577_v1  ;;  %35 = vst.msk [vmem:[#allocation2 + $0x88] sm:$0xff] %vm17_vm0, %v577_v1 }
   0xa   :  { %36 = vst.msk [vmem:[#allocation2 + $0x90] sm:$0xff] %vm17_vm0, %v577_v1  ;;  %37 = vst.msk [vmem:[#allocation2 + $0x98] sm:$0xff] %vm17_vm0, %v577_v1  ;;  %480 = vmatpush3.bf16.msra.mxu0 %v542_v3  ;;  %533 = vmatpush3.bf16.msra.mxu1 %v542_v3 }
   0xb   :  { %38 = vst.msk [vmem:[#allocation2 + $0xa0] sm:$0xff] %vm17_vm0, %v577_v1  ;;  %39 = vst.msk [vmem:[#allocation2 + $0xa8] sm:$0xff] %vm17_vm0, %v577_v1  ;;  %481 = vmatprep.subr.bf16.mxu0 %v577_v1  ;;  %530 = vmatprep.subr.bf16.mxu1 %v577_v1 }
   0xe   :  { %482 = vmatpush3.bf16.msra.mxu0 %v543_v4  ;;  %534 = vmatpush3.bf16.msra.mxu1 %v543_v4 }
   0xf   :  { %7 = vsyncpa [#allocation4], 0  ;;  %v546_v7 = vld [vmem:[%s774_s0 + $0x8] sm:$0xff]   ;;  %v547_v8 = vld [vmem:[%s774_s0 + $0x38] sm:$0xff]  }
  0x10   :  { %v548_v9 = vld [vmem:[%s774_s0 + $0x10] sm:$0xff]   ;;  %v549_v10 = vld [vmem:[%s774_s0 + $0x40] sm:$0xff]   ;;  %v550_v11 = vld [vmem:[%s774_s0 + $0x18] sm:$0xff]  }
  0x11   :  { %484 = vmatmul.mubr.msk.bf16.vlgmr.msra.gmra.mxu0 %vm171_vm2, %v544_v5  ;;  %508 = vmatmul.mubr.msk.bf16.vlgmr.msra.gmra.mxu1 %vm171_vm2, %v545_v6  ;;  %v551_v12 = vld [vmem:[%s774_s0 + $0x48] sm:$0xff]   ;;  %v552_v13 = vld [vmem:[%s774_s0 + $0x20] sm:$0xff]   ;;  %v553_v14 = vld [vmem:[%s774_s0 + $0x50] sm:$0xff]  }
  0x12   :  { %487 = vmatprep.mubr.msk.bf16.mxu0 %vm578_vm1, %v577_v1  ;;  %511 = vmatprep.mubr.msk.bf16.mxu1 %vm578_vm1, %v577_v1  ;;  %v554_v15 = vld [vmem:[%s774_s0 + $0x28] sm:$0xff]   ;;  %v40_v16 = vld [vmem:[#allocation2] sm:$0xff]  ;;  %v42_v31 = vld [vmem:[#allocation2 + $0x10] sm:$0xff]  ;;  %s579_s0 = smov [#allocation3]  }
  0x13   :  { %v52_v17 = vld [vmem:[#allocation2 + $0x60] sm:$0xff]  ;;  %v41_v23 = vld [vmem:[#allocation2 + $0x8] sm:$0xff]  ;;  %v54_v33 = vld [vmem:[#allocation2 + $0x70] sm:$0xff]  ;;  %s423_s10 = sshll.u32 %s579_s0, 4  ;;  %s424_s10 = int_to_ptr.vmem [resolvable:$true] %s423_s10 }
  0x14   :  { %v53_v25 = vld [vmem:[#allocation2 + $0x68] sm:$0xff]  ;;  %v43_v38 = vld [vmem:[#allocation2 + $0x18] sm:$0xff]  ;;  %v44_v48 = vld [vmem:[#allocation2 + $0x20] sm:$0xff]  ;;  %s555_s11 = scalar_lea.vmem %s424_s10, 2816  ;;  %p560_p1 = scmp.lt.s32.totalorder %s424_s10, %s424_s10 }
  0x15   :  { %v55_v43 = vld [vmem:[#allocation2 + $0x78] sm:$0xff]  ;;  %v56_v53 = vld [vmem:[#allocation2 + $0x80] sm:$0xff]  ;;  %v45_v58 = vld [vmem:[#allocation2 + $0x28] sm:$0xff]  ;;  %p556_p0 = scmp.ne.s32.totalorder %s424_s10, %s555_s11  ;;  %p561_p2 = scmp.lt.s32.totalorder %s555_s11, %s555_s11 }
  0x16   :  { %v57_v63 = vld [vmem:[#allocation2 + $0x88] sm:$0xff]  ;;  %v46_v4 = vld [vmem:[#allocation2 + $0x30] sm:$0xff] }
  0x17   :  { %p562_p3 = por %p561_p2, %p560_p1 }
  0x19   :  { %488 = vmatmul.mubr.msk.bf16.gmra.mxu0 %vm171_vm2, %v546_v7  ;;  %512 = vmatmul.mubr.msk.bf16.gmra.mxu1 %vm171_vm2, %v547_v8  ;;  %p563_p4 = pnand %p562_p3, %p556_p0 }
  0x1a   :  { %491 = vmatprep.mubr.msk.bf16.mxu0 %vm578_vm1, %v577_v1  ;;  %515 = vmatprep.mubr.msk.bf16.mxu1 %vm578_vm1, %v577_v1 }
  0x21   :  { %492 = vmatmul.mubr.msk.bf16.gmra.mxu0 %vm171_vm2, %v548_v9  ;;  %516 = vmatmul.mubr.msk.bf16.gmra.mxu1 %vm171_vm2, %v549_v10  ;;  %v58_v9 = vld [vmem:[#allocation2 + $0x90] sm:$0xff] }
  0x22   :  { %495 = vmatprep.mubr.msk.bf16.mxu0 %vm578_vm1, %v577_v1  ;;  %519 = vmatprep.mubr.msk.bf16.mxu1 %vm578_vm1, %v577_v1 }
  0x29   :  { %496 = vmatmul.mubr.msk.bf16.gmra.mxu0 %vm171_vm2, %v550_v11  ;;  %520 = vmatmul.mubr.msk.bf16.gmra.mxu1 %vm171_vm2, %v551_v12 }
  0x2a   :  { %499 = vmatprep.mubr.msk.bf16.mxu0 %vm578_vm1, %v577_v1  ;;  %523 = vmatprep.mubr.msk.bf16.mxu1 %vm578_vm1, %v577_v1 }
  0x31   :  { %500 = vmatmul.mubr.msk.bf16.gmra.mxu0 %vm171_vm2, %v552_v13  ;;  %524 = vmatmul.mubr.msk.bf16.gmra.mxu1 %vm171_vm2, %v553_v14  ;;  %v47_v14 = vld [vmem:[#allocation2 + $0x38] sm:$0xff] }
  0x32   :  { %503 = vmatprep.mubr.msk.bf16.mxu0 %vm578_vm1, %v577_v1 }
  0x39   :  { %504 = vmatmul.mubr.msk.bf16.gmra.mxu0 %vm171_vm2, %v554_v15 }
  0xd1   :  { %v239_v18 = vpop.f32.mrf.mxu0  ;;  %v287_v19 = vpop.f32.mrf.mxu1 }
  0xd2   :  { %v326_v20 = vadd.f32 %v239_v18, %v40_v16  ;;  %v338_v21 = vadd.f32 %v287_v19, %v52_v17  ;;  %v59_v19 = vld [vmem:[#allocation2 + $0x98] sm:$0xff] }
  0xd3   :  { %v485_v22 = vpop.f32.mrf.mxu0  ;;  %v509_v24 = vpop.f32.mrf.mxu1 }
  0xd4   :  { %349 = vst.msk [vmem:[#allocation2] sm:$0xff] %vm17_vm0, %v326_v20  ;;  %361 = vst.msk [vmem:[#allocation2 + $0x60] sm:$0xff] %vm17_vm0, %v338_v21  ;;  %v48_v24 = vld [vmem:[#allocation2 + $0x40] sm:$0xff] }
  0xd5   :  { %v242_v26 = vpop.f32.mrf.mxu0  ;;  %v290_v27 = vpop.f32.mrf.mxu1 }
  0xd6   :  { %v327_v28 = vadd.f32 %v242_v26, %v41_v23  ;;  %v339_v29 = vadd.f32 %v290_v27, %v53_v25 }
  0xd7   :  { %v486_v30 = vpop.f32.mrf.mxu0  ;;  %v510_v32 = vpop.f32.mrf.mxu1 }
  0xd8   :  { %350 = vst.msk [vmem:[#allocation2 + $0x8] sm:$0xff] %vm17_vm0, %v327_v28  ;;  %362 = vst.msk [vmem:[#allocation2 + $0x68] sm:$0xff] %vm17_vm0, %v339_v29  ;;  %v60_v29 = vld [vmem:[#allocation2 + $0xa0] sm:$0xff] }
  0xd9   :  { %v247_v34 = vpop.f32.mrf.mxu0  ;;  %v295_v35 = vpop.f32.mrf.mxu1 }
  0xda   :  { %v328_v36 = vadd.f32 %v247_v34, %v42_v31  ;;  %v340_v37 = vadd.f32 %v295_v35, %v54_v33  ;;  %v49_v34 = vld [vmem:[#allocation2 + $0x48] sm:$0xff] }
  0xdb   :  { %v374_v39 = vld [vmem:[#allocation2] sm:$0xff]  ;;  %v489_v41 = vpop.f32.mrf.mxu0  ;;  %v513_v42 = vpop.f32.mrf.mxu1 }
  0xdc   :  { %v386_v40 = vld [vmem:[#allocation2 + $0x60] sm:$0xff]  ;;  %396 = vst.msk [vmem:[#allocation3] sm:$0xff] %vm17_vm0, %v374_v39  ;;  %351 = vst.msk [vmem:[#allocation2 + $0x10] sm:$0xff] %vm17_vm0, %v328_v36  ;;  %v61_v39 = vld [vmem:[#allocation2 + $0xa8] sm:$0xff] }
  0xdd   :  { %408 = vst.msk [vmem:[#allocation3 + $0x60] sm:$0xff] %vm17_vm0, %v386_v40  ;;  %363 = vst.msk [vmem:[#allocation2 + $0x70] sm:$0xff] %vm17_vm0, %v340_v37  ;;  %v250_v44 = vpop.f32.mrf.mxu0  ;;  %v298_v45 = vpop.f32.mrf.mxu1 }
  0xde   :  { %v329_v46 = vadd.f32 %v250_v44, %v43_v38  ;;  %v341_v47 = vadd.f32 %v298_v45, %v55_v43 }
  0xdf   :  { %v375_v49 = vld [vmem:[#allocation2 + $0x8] sm:$0xff]  ;;  %v490_v51 = vpop.f32.mrf.mxu0  ;;  %v514_v52 = vpop.f32.mrf.mxu1 }
  0xe0   :  { %v387_v50 = vld [vmem:[#allocation2 + $0x68] sm:$0xff]  ;;  %397 = vst.msk [vmem:[#allocation3 + $0x8] sm:$0xff] %vm17_vm0, %v375_v49  ;;  %352 = vst.msk [vmem:[#allocation2 + $0x18] sm:$0xff] %vm17_vm0, %v329_v46 }
  0xe1   :  { %409 = vst.msk [vmem:[#allocation3 + $0x68] sm:$0xff] %vm17_vm0, %v387_v50  ;;  %364 = vst.msk [vmem:[#allocation2 + $0x78] sm:$0xff] %vm17_vm0, %v341_v47  ;;  %v255_v54 = vpop.f32.mrf.mxu0  ;;  %v303_v55 = vpop.f32.mrf.mxu1  ;;  %v50_v47 = vld [vmem:[#allocation2 + $0x50] sm:$0xff] }
  0xe2   :  { %v330_v56 = vadd.f32 %v255_v54, %v44_v48  ;;  %v342_v57 = vadd.f32 %v303_v55, %v56_v53  ;;  %v51_v54 = vld [vmem:[#allocation2 + $0x58] sm:$0xff] }
  0xe3   :  { %v376_v59 = vld [vmem:[#allocation2 + $0x10] sm:$0xff]  ;;  %v493_v61 = vpop.f32.mrf.mxu0  ;;  %v517_v62 = vpop.f32.mrf.mxu1 }
  0xe4   :  { %v388_v60 = vld [vmem:[#allocation2 + $0x70] sm:$0xff]  ;;  %398 = vst.msk [vmem:[#allocation3 + $0x10] sm:$0xff] %vm17_vm0, %v376_v59  ;;  %353 = vst.msk [vmem:[#allocation2 + $0x20] sm:$0xff] %vm17_vm0, %v330_v56 }
  0xe5   :  { %410 = vst.msk [vmem:[#allocation3 + $0x70] sm:$0xff] %vm17_vm0, %v388_v60  ;;  %365 = vst.msk [vmem:[#allocation2 + $0x80] sm:$0xff] %vm17_vm0, %v342_v57  ;;  %v258_v0 = vpop.f32.mrf.mxu0  ;;  %v306_v1 = vpop.f32.mrf.mxu1 }
  0xe6   :  { %v331_v2 = vadd.f32 %v258_v0, %v45_v58  ;;  %v343_v3 = vadd.f32 %v306_v1, %v57_v63 }
  0xe7   :  { %v377_v5 = vld [vmem:[#allocation2 + $0x18] sm:$0xff]  ;;  %v494_v7 = vpop.f32.mrf.mxu0  ;;  %v518_v8 = vpop.f32.mrf.mxu1 }
  0xe8   :  { %v389_v6 = vld [vmem:[#allocation2 + $0x78] sm:$0xff]  ;;  %399 = vst.msk [vmem:[#allocation3 + $0x18] sm:$0xff] %vm17_vm0, %v377_v5  ;;  %354 = vst.msk [vmem:[#allocation2 + $0x28] sm:$0xff] %vm17_vm0, %v331_v2 }
  0xe9   :  { %411 = vst.msk [vmem:[#allocation3 + $0x78] sm:$0xff] %vm17_vm0, %v389_v6  ;;  %366 = vst.msk [vmem:[#allocation2 + $0x88] sm:$0xff] %vm17_vm0, %v343_v3  ;;  %v263_v10 = vpop.f32.mrf.mxu0  ;;  %v311_v11 = vpop.f32.mrf.mxu1 }
  0xea   :  { %v332_v12 = vadd.f32 %v263_v10, %v46_v4  ;;  %v344_v13 = vadd.f32 %v311_v11, %v58_v9 }
  0xeb   :  { %v378_v15 = vld [vmem:[#allocation2 + $0x20] sm:$0xff]  ;;  %v497_v17 = vpop.f32.mrf.mxu0  ;;  %v521_v18 = vpop.f32.mrf.mxu1 }
  0xec   :  { %v390_v16 = vld [vmem:[#allocation2 + $0x80] sm:$0xff]  ;;  %400 = vst.msk [vmem:[#allocation3 + $0x20] sm:$0xff] %vm17_vm0, %v378_v15  ;;  %355 = vst.msk [vmem:[#allocation2 + $0x30] sm:$0xff] %vm17_vm0, %v332_v12 }
  0xed   :  { %412 = vst.msk [vmem:[#allocation3 + $0x80] sm:$0xff] %vm17_vm0, %v390_v16  ;;  %367 = vst.msk [vmem:[#allocation2 + $0x90] sm:$0xff] %vm17_vm0, %v344_v13  ;;  %v266_v20 = vpop.f32.mrf.mxu0  ;;  %v314_v21 = vpop.f32.mrf.mxu1 }
  0xee   :  { %v333_v22 = vadd.f32 %v266_v20, %v47_v14  ;;  %v345_v23 = vadd.f32 %v314_v21, %v59_v19 }
  0xef   :  { %v379_v25 = vld [vmem:[#allocation2 + $0x28] sm:$0xff]  ;;  %v498_v27 = vpop.f32.mrf.mxu0  ;;  %v522_v28 = vpop.f32.mrf.mxu1 }
  0xf0   :  { %v391_v26 = vld [vmem:[#allocation2 + $0x88] sm:$0xff]  ;;  %401 = vst.msk [vmem:[#allocation3 + $0x28] sm:$0xff] %vm17_vm0, %v379_v25  ;;  %356 = vst.msk [vmem:[#allocation2 + $0x38] sm:$0xff] %vm17_vm0, %v333_v22 }
  0xf1   :  { %413 = vst.msk [vmem:[#allocation3 + $0x88] sm:$0xff] %vm17_vm0, %v391_v26  ;;  %368 = vst.msk [vmem:[#allocation2 + $0x98] sm:$0xff] %vm17_vm0, %v345_v23  ;;  %v271_v30 = vpop.f32.mrf.mxu0  ;;  %v319_v31 = vpop.f32.mrf.mxu1 }
  0xf2   :  { %v334_v32 = vadd.f32 %v271_v30, %v48_v24  ;;  %v346_v33 = vadd.f32 %v319_v31, %v60_v29 }
  0xf3   :  { %v380_v35 = vld [vmem:[#allocation2 + $0x30] sm:$0xff]  ;;  %v501_v37 = vpop.f32.mrf.mxu0  ;;  %v525_v38 = vpop.f32.mrf.mxu1 }
  0xf4   :  { %v392_v36 = vld [vmem:[#allocation2 + $0x90] sm:$0xff]  ;;  %402 = vst.msk [vmem:[#allocation3 + $0x30] sm:$0xff] %vm17_vm0, %v380_v35  ;;  %357 = vst.msk [vmem:[#allocation2 + $0x40] sm:$0xff] %vm17_vm0, %v334_v32 }
  0xf5   :  { %414 = vst.msk [vmem:[#allocation3 + $0x90] sm:$0xff] %vm17_vm0, %v392_v36  ;;  %369 = vst.msk [vmem:[#allocation2 + $0xa0] sm:$0xff] %vm17_vm0, %v346_v33  ;;  %v274_v40 = vpop.f32.mrf.mxu0  ;;  %v322_v41 = vpop.f32.mrf.mxu1 }
  0xf6   :  { %v335_v42 = vadd.f32 %v274_v40, %v49_v34  ;;  %v347_v43 = vadd.f32 %v322_v41, %v61_v39 }
  0xf7   :  { %v381_v44 = vld [vmem:[#allocation2 + $0x38] sm:$0xff]  ;;  %v502_v46 = vpop.f32.mrf.mxu0  ;;  %v526_v48 = vpop.f32.mrf.mxu1 }
  0xf8   :  { %v393_v45 = vld [vmem:[#allocation2 + $0x98] sm:$0xff]  ;;  %403 = vst.msk [vmem:[#allocation3 + $0x38] sm:$0xff] %vm17_vm0, %v381_v44  ;;  %358 = vst.msk [vmem:[#allocation2 + $0x48] sm:$0xff] %vm17_vm0, %v335_v42 }
  0xf9   :  { %415 = vst.msk [vmem:[#allocation3 + $0x98] sm:$0xff] %vm17_vm0, %v393_v45  ;;  %370 = vst.msk [vmem:[#allocation2 + $0xa8] sm:$0xff] %vm17_vm0, %v347_v43  ;;  %v279_v49 = vpop.f32.mrf.mxu0 }
  0xfa   :  { %v336_v50 = vadd.f32 %v279_v49, %v50_v47 }
  0xfb   :  { %v382_v51 = vld [vmem:[#allocation2 + $0x40] sm:$0xff]  ;;  %v505_v53 = vpop.f32.mrf.mxu0 }
  0xfc   :  { %v394_v52 = vld [vmem:[#allocation2 + $0xa0] sm:$0xff]  ;;  %404 = vst.msk [vmem:[#allocation3 + $0x40] sm:$0xff] %vm17_vm0, %v382_v51  ;;  %359 = vst.msk [vmem:[#allocation2 + $0x50] sm:$0xff] %vm17_vm0, %v336_v50 }
  0xfd   :  { %416 = vst.msk [vmem:[#allocation3 + $0xa0] sm:$0xff] %vm17_vm0, %v394_v52  ;;  %v282_v55 = vpop.f32.mrf.mxu0 }
  0xfe   :  { %v337_v56 = vadd.f32 %v282_v55, %v51_v54 }
  0xff   :  { %v383_v57 = vld [vmem:[#allocation2 + $0x48] sm:$0xff]  ;;  %v506_v59 = vpop.f32.mrf.mxu0 }
 0x100   :  { %v395_v58 = vld [vmem:[#allocation2 + $0xa8] sm:$0xff]  ;;  %405 = vst.msk [vmem:[#allocation3 + $0x48] sm:$0xff] %vm17_vm0, %v383_v57  ;;  %360 = vst.msk [vmem:[#allocation2 + $0x58] sm:$0xff] %vm17_vm0, %v337_v56 }
 0x101   :  { %417 = vst.msk [vmem:[#allocation3 + $0xa8] sm:$0xff] %vm17_vm0, %v395_v58 }
 0x103   :  { %v384_v60 = vld [vmem:[#allocation2 + $0x50] sm:$0xff] }
 0x104   :  { %406 = vst.msk [vmem:[#allocation3 + $0x50] sm:$0xff] %vm17_vm0, %v384_v60 }
 0x107   :  { %v385_v61 = vld [vmem:[#allocation2 + $0x58] sm:$0xff] }
 0x108   :  { %407 = vst.msk [vmem:[#allocation3 + $0x58] sm:$0xff] %vm17_vm0, %v385_v61 }
 0x109   :  { %566 = shalt.err (!%p563_p4)
}
 0x10a   :  { %s580_s12 = smov 128   ;;  %s581_s13 = smov 8  }
 0x10b   :  { %429 = dma.vmem_to_hbm [thread:$0]  %s424_s10, 2816, %s776_s2, [#allocation4], %s580_s12, %s580_s12, %s581_s13  }
 0x10c   :  { %575 = dma.done.wait [#allocation4], 2816  }
 0x10d   :  { %576 = vsyncadd [#allocation4], 4294964480 }
 0x10e   :  { %433 = vsyncpa [#allocation4], 1 }

</bundles_post_ra>
